<compile_context>
chip_gen: v7x
topology: tpu7x:2x2x1
jax: 0.10.0
libtpu: 0.0.40
codegen_flags: <defaults>
</compile_context>

<pallas_src>
import numpy as np
import jax
import jax.numpy as jnp
from jax.experimental import pallas as pl
from jax.experimental.pallas import tpu as pltpu


def _dma_copy_kernel(src_hbm, dst_hbm, sem):
    # Whole-buffer HBM->HBM DMA: no VMEM staging, no grid, no masked stores.
    # One large descriptor saturates HBM for a pure bandwidth op.
    cp = pltpu.make_async_copy(src_hbm, dst_hbm, sem)
    cp.start()
    cp.wait()


def _pallas_identity_copy(x):
    """Materialized identity copy of `x` via a single direct HBM->HBM DMA."""
    nbytes = int(x.size) * jnp.dtype(x.dtype).itemsize
    return pl.pallas_call(
        _dma_copy_kernel,
        out_shape=jax.ShapeDtypeStruct(x.shape, x.dtype),
        in_specs=[pl.BlockSpec(memory_space=pl.ANY)],   # raw HBM ref, no auto-DMA
        out_specs=pl.BlockSpec(memory_space=pl.ANY),    # raw HBM ref, DMA target
        scratch_shapes=[pltpu.SemaphoreType.DMA],
        cost_estimate=pl.CostEstimate(
            flops=0, transcendentals=0, bytes_accessed=2 * nbytes),
    )(x)


def _resolve_view_size(numel, size):
    """Replicate torch.Tensor.view() shape resolution (single -1 allowed)."""
    size = list(size)
    neg = [i for i, s in enumerate(size) if s == -1]
    if len(neg) > 1:
        raise ValueError("only one dimension can be inferred")
    if neg:
        known = 1
        for s in size:
            if s != -1:
                known *= int(s)
        if known == 0 or numel % known != 0:
            raise ValueError(f"shape {tuple(size)} is invalid for input of size {numel}")
        size[neg[0]] = numel // known
    total = 1
    for s in size:
        total *= int(s)
    if total != numel:
        raise ValueError(f"shape {tuple(size)} is invalid for input of size {numel}")
    return tuple(int(s) for s in size)


class View:
    """JAX/Pallas equivalent of the PyTorch View module.

    copy=True  (default): materialize the result through the Pallas
                          HBM->HBM DMA kernel (explicit data movement).
    copy=False           : zero-cost metadata-only path, identical to
                           torch .view() on a contiguous tensor.
    """

    def __init__(self, size, copy=True):
        self.size = tuple(size)
        self.copy = copy

    def __call__(self, tensor):
        numel = int(np.prod(tensor.shape))
        out_shape = _resolve_view_size(numel, self.size)
        if (not self.copy) or numel == 0:
            # torch .view() on a contiguous tensor moves zero bytes.
            return jnp.reshape(tensor, out_shape)
        # Explicit data-movement version: copy the buffer as-is (the DMA is
        # shape/dtype-agnostic, so no padding or lane alignment is needed),
        # then apply the metadata-only reshape.
        return jnp.reshape(_pallas_identity_copy(tensor), out_shape)


if __name__ == "__main__":
    key = jax.random.PRNGKey(0)

    # Small NCHW input consistent with SlowVAE usage of View
    # (flattening an encoder feature map before the FC head).
    x = jax.random.normal(key, (2, 4, 16, 16), dtype=jnp.float32)

    view = View((-1, 4 * 16 * 16))                  # -> (2, 1024), Pallas DMA copy
    y = jax.block_until_ready(view(x))
    ref = np.asarray(x).reshape(-1, 4 * 16 * 16)
    assert y.shape == (2, 1024), y.shape
    assert y.dtype == x.dtype
    np.testing.assert_array_equal(np.asarray(y), ref)

    # Non-(8,128)-aligned shape: the DMA path needs no padding or slicing.
    x2 = jax.random.normal(jax.random.PRNGKey(0), (3, 5, 7), dtype=jnp.float32)
    y2 = jax.block_until_ready(View((-1, 35))(x2))
    np.testing.assert_array_equal(np.asarray(y2), np.asarray(x2).reshape(-1, 35))

    # Different dtype through the same shape-agnostic DMA.
    x3 = jax.random.normal(jax.random.PRNGKey(0), (2, 8, 8)).astype(jnp.bfloat16)
    y3 = jax.block_until_ready(View((2, -1))(x3))
    assert y3.shape == (2, 64) and y3.dtype == jnp.bfloat16
    assert bool(jnp.array_equal(y3, jnp.reshape(x3, (2, 64))))

    # Zero-cost fast path (exact torch.view semantics: metadata-only reshape).
    y_fast = jax.block_until_ready(View((-1, 1024), copy=False)(x))
    np.testing.assert_array_equal(np.asarray(y_fast), ref)

    print("KERNEL_OK")
</pallas_src>

<mosaic_0001>
module attributes {stable_mosaic.version = 11 : i64} {
  func.func @_dma_copy_kernel(%arg0: memref<2x4x16x16xf32, #tpu.memory_space<any>>, %arg1: memref<2x4x16x16xf32, #tpu.memory_space<any>>, %arg2: memref<!tpu.dma_semaphore, #tpu.memory_space<semaphore_mem>>) attributes {dimension_semantics = [], scalar_prefetch = 0 : i64, scratch_operands = 1 : i64, tpu.core_type = #tpu.core_type<tc>} {
    tpu.enqueue_dma source(%arg0 : memref<2x4x16x16xf32, #tpu.memory_space<any>>) target(%arg1 : memref<2x4x16x16xf32, #tpu.memory_space<any>>) target_semaphore(%arg2 : memref<!tpu.dma_semaphore, #tpu.memory_space<semaphore_mem>>)
    tpu.wait_dma2 semaphore(%arg2 : memref<!tpu.dma_semaphore, #tpu.memory_space<semaphore_mem>>) src(%arg0 : memref<2x4x16x16xf32, #tpu.memory_space<any>>) dst(%arg1 : memref<2x4x16x16xf32, #tpu.memory_space<any>>)
    return
  }
}

</mosaic_0001>

<bundles_post_ra>
// kernel: tpu_custom_call.1
= control target key start
LH: loop header
LB: loop body
LE: loop exit
PB: predicated region body
PF: predicated region fallthrough
CT: control target
= control target key end

     0   :  { %s36_s6 = smov [#allocation2]   ;;  %s37_s7 = smov [#allocation3]   ;;  %s55_s0 = inlined_call_operand.hbm [shape: f32[2,4,16,16], index: 0, kind: input, shape index: {}]   ;;  %s56_s1 = inlined_call_operand.hbm [shape: f32[2,4,16,16], index: 1, kind: output, shape index: {}]  }
   0x1   :  { %s38_s8 = smov 0  }
   0x2   :  { %18 = dma.general %s55_s0, 2048, %s56_s1, %s36_s6, %s37_s7, [#allocation4], %s38_s8, 0  }
   0x3   :  { %34 = dma.done.wait [#allocation2], 2048 }
   0x4   :  { %35 = vsyncadd [#allocation2], 4294965248 }
   0x5   :  { %24 = vsyncmov [#allocation2] }
   0x8   :  { %s25_s13 = vpop.sfrf %24 }
   0x9   :  { %p30_p0 = scmp.ne.s32.totalorder %s25_s13, 0 }
   0xb   :  { %29 = shalt.err (%p30_p0)  }

</bundles_post_ra>
